<compile_context>
chip_gen: v6e
topology: v6e:2x2x1
jax: 0.10.0
libtpu: 0.0.40
codegen_flags: <defaults>
</compile_context>

<pallas_src>
import jax
import jax.numpy as jnp
from jax.experimental import pallas as pl
from jax.experimental.pallas import tpu as pltpu

# Stand-in activation fake-quant parameters (observer-derived in real QAT).
# TODO(synk): QuantStub observer calibration (running min/max updates) is not modeled;
#             fixed qparams are passed to the kernel via SMEM instead.
ACT_SCALE = 0.05
ACT_ZERO_POINT = 0.0
QMIN, QMAX = -128.0, 127.0        # int8 grid
K_SIZE = 3                        # 3x3 conv


def qat_conv_relu_kernel(qp_ref, x_ref, bmat_ref, bias_ref, o_ref):
    """One (batch, row-block) tile: fake-quant -> 3 banded bf16 matmuls -> +bias -> ReLU."""
    # qp_ref   : SMEM (4,)                 f32  [scale, 1/scale, zero_point, zero_point*scale]
    # x_ref    : VMEM (1, 1, TH+2, Wp*C)   f32  padded NHWC rows (2-row halo)
    # bmat_ref : VMEM (K, Wp*C, W*C_out)   bf16 banded, per-channel fake-quantized conv weights
    # bias_ref : VMEM (8, W*C_out)         f32  bias tiled over w, replicated on sublanes
    # o_ref    : VMEM (1, 1, TH, W*C_out)  f32
    s = qp_ref[0]
    inv_s = qp_ref[1]
    zp = qp_ref[2]
    zp_s = qp_ref[3]
    th = o_ref.shape[2]

    acc = jnp.zeros(o_ref.shape[2:], dtype=jnp.float32)
    for dy in range(K_SIZE):                              # static unroll over the 3 row taps
        x_dy = x_ref[0, 0, dy:dy + th, :]                 # (TH, Wp*C) f32
        # --- QuantStub: fake-quantize activations (round-half-even, matches PyTorch) ---
        q = jnp.clip(jnp.round(x_dy * inv_s) + zp, QMIN, QMAX)
        xq = (q * s - zp_s).astype(jnp.bfloat16)          # dequantized grid values, bf16 MXU feed
        # --- conv row-tap as a matmul against the banded weight matrix (f32 accumulation) ---
        acc += jnp.dot(xq, bmat_ref[dy], preferred_element_type=jnp.float32)

    acc += bias_ref[0:1, :]                               # sublane-broadcast bias row
    # --- ReLU; DeQuantStub is identity in fp32 QAT ---
    o_ref[0, 0] = jnp.maximum(acc, 0.0)


def quantized_model_forward(x_nchw, w_oihw, bias, *, tile_rows=8):
    """QuantStub -> Conv2d(C->C_out, 3x3, pad=1) -> ReLU -> DeQuantStub (PyTorch NCHW in/out)."""
    N, C, H, W = x_nchw.shape
    C_out, C_in, K, K2 = w_oihw.shape
    assert C_in == C and K == K_SIZE and K2 == K_SIZE

    tile_rows = min(tile_rows, H)
    n_hblk = pl.cdiv(H, tile_rows)
    H_pad = n_hblk * tile_rows
    Wp = W + 2
    fan = Wp * C                     # lane width of one padded input row
    out_lanes = W * C_out            # lane width of one output row (128 for W=16, C_out=8)

    # ---- activations: NCHW -> padded NHWC row-windows with a 2-row halo (no im2col slab) ----
    x_nhwc = jnp.transpose(x_nchw, (0, 2, 3, 1)).astype(jnp.float32)          # (N,H,W,C)
    x_p = jnp.pad(x_nhwc, ((0, 0), (1, 1 + H_pad - H), (1, 1), (0, 0)))       # (N,H_pad+2,Wp,C)
    x_rows = x_p.reshape(N, H_pad + 2, fan)
    windows = jnp.stack(
        [x_rows[:, j * tile_rows: j * tile_rows + tile_rows + 2, :] for j in range(n_hblk)],
        axis=1)                                                               # (N,nH,TH+2,fan)

    # ---- weights: per-out-channel symmetric fake-quant (post-prepare() QAT Conv2d) ----
    w = w_oihw.astype(jnp.float32)
    w_scale = jnp.maximum(jnp.max(jnp.abs(w), axis=(1, 2, 3), keepdims=True), 1e-12) / 127.0
    w_q = jnp.clip(jnp.round(w / w_scale), -127.0, 127.0) * w_scale           # (Co,Ci,K,K)

    # Banded matrices: B[dy, (w+dx)*C + ci, w*C_out + co] = w_q[co, ci, dy, dx]; zeros elsewhere.
    bmat = jnp.zeros((K_SIZE, fan, out_lanes), jnp.float32)
    for dx in range(K_SIZE):
        blk = jnp.transpose(w_q[:, :, :, dx], (2, 1, 0))                      # (K, C, C_out)
        for wcol in range(W):
            bmat = bmat.at[:, (wcol + dx) * C:(wcol + dx) * C + C,
                           wcol * C_out:(wcol + 1) * C_out].set(blk)
    bmat = bmat.astype(jnp.bfloat16)                                          # bf16 MXU feed

    # Bias tiled over w (lane layout w*C_out + co), replicated into an aligned (8, lanes) block.
    bias_row = jnp.broadcast_to(jnp.tile(bias.astype(jnp.float32), W)[None, :],
                                (8, out_lanes))

    # Activation qparams as SMEM scalars: [scale, 1/scale, zero_point, zero_point*scale].
    qparams = jnp.array([ACT_SCALE, 1.0 / ACT_SCALE, ACT_ZERO_POINT,
                         ACT_ZERO_POINT * ACT_SCALE], dtype=jnp.float32)

    flops = 2 * N * n_hblk * tile_rows * fan * out_lanes * K_SIZE
    bytes_accessed = (windows.size * 4 + bmat.size * 2 + bias_row.size * 4 + 16
                      + N * n_hblk * tile_rows * out_lanes * 4)

    out = pl.pallas_call(
        qat_conv_relu_kernel,
        out_shape=jax.ShapeDtypeStruct((N, n_hblk, tile_rows, out_lanes), jnp.float32),
        grid=(N, n_hblk),
        in_specs=[
            pl.BlockSpec(memory_space=pltpu.MemorySpace.SMEM),                     # qparams
            pl.BlockSpec((1, 1, tile_rows + 2, fan), lambda n, j: (n, j, 0, 0)),   # act rows
            pl.BlockSpec((K_SIZE, fan, out_lanes), lambda n, j: (0, 0, 0)),        # weights
            pl.BlockSpec((8, out_lanes), lambda n, j: (0, 0)),                     # bias
        ],
        out_specs=pl.BlockSpec((1, 1, tile_rows, out_lanes), lambda n, j: (n, j, 0, 0)),
        compiler_params=pltpu.CompilerParams(
            dimension_semantics=("parallel", "parallel")),
        cost_estimate=pl.CostEstimate(flops=flops, transcendentals=0,
                                      bytes_accessed=bytes_accessed),
    )(qparams, windows, bmat, bias_row)

    # (N, nH, TH, W*C_out) -> (N, H, W, C_out) -> PyTorch NCHW.
    y = out.reshape(N, H_pad, W, C_out)[:, :H]
    return jnp.transpose(y, (0, 3, 1, 2))


if __name__ == "__main__":
    key = jax.random.PRNGKey(0)
    kx, kw, kb = jax.random.split(key, 3)

    N, C_in, H, W = 2, 4, 16, 16
    C_out = 8

    x = jax.random.normal(kx, (N, C_in, H, W), dtype=jnp.float32)
    w = jax.random.normal(kw, (C_out, C_in, K_SIZE, K_SIZE), dtype=jnp.float32) * 0.1
    b = jax.random.normal(kb, (C_out,), dtype=jnp.float32) * 0.1

    y = jax.jit(quantized_model_forward)(x, w, b)
    jax.block_until_ready(y)
    assert y.shape == (N, C_out, H, W) and y.dtype == jnp.float32

    # Reference (same fake-quant semantics, fp32 conv via XLA) to validate the banded-matmul path.
    q = jnp.clip(jnp.round(x / ACT_SCALE) + ACT_ZERO_POINT, QMIN, QMAX)
    xq = (q - ACT_ZERO_POINT) * ACT_SCALE
    ws = jnp.maximum(jnp.max(jnp.abs(w), axis=(1, 2, 3), keepdims=True), 1e-12) / 127.0
    wq = jnp.clip(jnp.round(w / ws), -127.0, 127.0) * ws
    y_ref = jax.lax.conv_general_dilated(
        xq, wq, window_strides=(1, 1), padding=((1, 1), (1, 1)),
        dimension_numbers=("NCHW", "OIHW", "NCHW")) + b.reshape(1, -1, 1, 1)
    y_ref = jnp.maximum(y_ref, 0.0)
    err = float(jnp.max(jnp.abs(y - y_ref)))
    assert err < 0.1, f"max abs error vs fp32 reference: {err}"   # bf16 MXU operand rounding
    print("KERNEL_OK")
</pallas_src>

<mosaic_0001>
module attributes {stable_mosaic.version = 11 : i64} {
  func.func @qat_conv_relu_kernel(%arg0: i32, %arg1: i32, %arg2: memref<4xf32, #tpu.memory_space<smem>>, %arg3: memref<1x1x10x72xf32, #tpu.memory_space<vmem>>, %arg4: memref<3x72x128xbf16, #tpu.memory_space<vmem>>, %arg5: memref<8x128xf32, #tpu.memory_space<vmem>>, %arg6: memref<1x1x8x128xf32, #tpu.memory_space<vmem>>) attributes {dimension_semantics = [#tpu.dimension_semantics<parallel>, #tpu.dimension_semantics<parallel>], iteration_bounds = array<i64: 2, 2>, scalar_prefetch = 0 : i64, scratch_operands = 0 : i64, tpu.core_type = #tpu.core_type<tc>, window_params = [{transform_indices = @transform_0, window_bounds = array<i64: 4>}, {transform_indices = @transform_1, window_bounds = array<i64: 1, 1, 10, 72>}, {pipeline_mode = #tpu.pipeline_mode<synchronous>, transform_indices = @transform_2, window_bounds = array<i64: 3, 72, 128>}, {pipeline_mode = #tpu.pipeline_mode<synchronous>, transform_indices = @transform_3, window_bounds = array<i64: 8, 128>}, {transform_indices = @transform_4, window_bounds = array<i64: 1, 1, 8, 128>}]} {
    %c0 = arith.constant 0 : index
    %0 = memref.load %arg2[%c0] : memref<4xf32, #tpu.memory_space<smem>>
    %c1 = arith.constant 1 : index
    %1 = memref.load %arg2[%c1] : memref<4xf32, #tpu.memory_space<smem>>
    %c2 = arith.constant 2 : index
    %2 = memref.load %arg2[%c2] : memref<4xf32, #tpu.memory_space<smem>>
    %c3 = arith.constant 3 : index
    %3 = memref.load %arg2[%c3] : memref<4xf32, #tpu.memory_space<smem>>
    %cst = arith.constant 0.000000e+00 : f32
    %4 = vector.broadcast %cst : f32 to vector<8x128xf32>
    %c0_0 = arith.constant 0 : index
    %c0_1 = arith.constant 0 : index
    %c0_2 = arith.constant 0 : index
    %c0_3 = arith.constant 0 : index
    %5 = vector.load %arg3[%c0_0, %c0_1, %c0_2, %c0_3] : memref<1x1x10x72xf32, #tpu.memory_space<vmem>>, vector<1x1x8x72xf32>
    %6 = vector.shape_cast %5 : vector<1x1x8x72xf32> to vector<8x72xf32>
    %7 = vector.broadcast %1 : f32 to vector<8x72xf32>
    %8 = arith.mulf %6, %7 : vector<8x72xf32>
    %9 = math.roundeven %8 : vector<8x72xf32>
    %10 = vector.broadcast %2 : f32 to vector<8x72xf32>
    %11 = arith.addf %9, %10 : vector<8x72xf32>
    %cst_4 = arith.constant -1.280000e+02 : f32
    %cst_5 = arith.constant 1.270000e+02 : f32
    %12 = vector.broadcast %cst_4 : f32 to vector<8x72xf32>
    %13 = arith.maximumf %12, %11 : vector<8x72xf32>
    %14 = vector.broadcast %cst_5 : f32 to vector<8x72xf32>
    %15 = arith.minimumf %14, %13 : vector<8x72xf32>
    %16 = vector.broadcast %0 : f32 to vector<8x72xf32>
    %17 = arith.mulf %15, %16 : vector<8x72xf32>
    %18 = vector.broadcast %3 : f32 to vector<8x72xf32>
    %19 = arith.subf %17, %18 : vector<8x72xf32>
    %20 = arith.truncf %19 : vector<8x72xf32> to vector<8x72xbf16>
    %c0_6 = arith.constant 0 : index
    %c0_7 = arith.constant 0 : index
    %c0_8 = arith.constant 0 : index
    %21 = vector.load %arg4[%c0_6, %c0_7, %c0_8] : memref<3x72x128xbf16, #tpu.memory_space<vmem>>, vector<1x72x128xbf16>
    %22 = vector.shape_cast %21 : vector<1x72x128xbf16> to vector<72x128xbf16>
    %cst_9 = arith.constant dense<0.000000e+00> : vector<8x128xf32>
    %23 = tpu.matmul %20, %22, %cst_9 {dimension_numbers = #tpu.dot_dimension_numbers<[1], [0], [0], [1], [0, 0, 1, 1], [], []>} : vector<8x72xbf16>, vector<72x128xbf16>, vector<8x128xf32> -> vector<8x128xf32>
    %24 = arith.addf %4, %23 : vector<8x128xf32>
    %c0_10 = arith.constant 0 : index
    %c0_11 = arith.constant 0 : index
    %c1_12 = arith.constant 1 : index
    %c0_13 = arith.constant 0 : index
    %25 = vector.load %arg3[%c0_10, %c0_11, %c1_12, %c0_13] : memref<1x1x10x72xf32, #tpu.memory_space<vmem>>, vector<1x1x8x72xf32>
    %26 = vector.shape_cast %25 : vector<1x1x8x72xf32> to vector<8x72xf32>
    %27 = vector.broadcast %1 : f32 to vector<8x72xf32>
    %28 = arith.mulf %26, %27 : vector<8x72xf32>
    %29 = math.roundeven %28 : vector<8x72xf32>
    %30 = vector.broadcast %2 : f32 to vector<8x72xf32>
    %31 = arith.addf %29, %30 : vector<8x72xf32>
    %cst_14 = arith.constant -1.280000e+02 : f32
    %cst_15 = arith.constant 1.270000e+02 : f32
    %32 = vector.broadcast %cst_14 : f32 to vector<8x72xf32>
    %33 = arith.maximumf %32, %31 : vector<8x72xf32>
    %34 = vector.broadcast %cst_15 : f32 to vector<8x72xf32>
    %35 = arith.minimumf %34, %33 : vector<8x72xf32>
    %36 = vector.broadcast %0 : f32 to vector<8x72xf32>
    %37 = arith.mulf %35, %36 : vector<8x72xf32>
    %38 = vector.broadcast %3 : f32 to vector<8x72xf32>
    %39 = arith.subf %37, %38 : vector<8x72xf32>
    %40 = arith.truncf %39 : vector<8x72xf32> to vector<8x72xbf16>
    %c1_16 = arith.constant 1 : index
    %c0_17 = arith.constant 0 : index
    %c0_18 = arith.constant 0 : index
    %41 = vector.load %arg4[%c1_16, %c0_17, %c0_18] : memref<3x72x128xbf16, #tpu.memory_space<vmem>>, vector<1x72x128xbf16>
    %42 = vector.shape_cast %41 : vector<1x72x128xbf16> to vector<72x128xbf16>
    %cst_19 = arith.constant dense<0.000000e+00> : vector<8x128xf32>
    %43 = tpu.matmul %40, %42, %cst_19 {dimension_numbers = #tpu.dot_dimension_numbers<[1], [0], [0], [1], [0, 0, 1, 1], [], []>} : vector<8x72xbf16>, vector<72x128xbf16>, vector<8x128xf32> -> vector<8x128xf32>
    %44 = arith.addf %24, %43 : vector<8x128xf32>
    %c0_20 = arith.constant 0 : index
    %c0_21 = arith.constant 0 : index
    %c2_22 = arith.constant 2 : index
    %c0_23 = arith.constant 0 : index
    %45 = vector.load %arg3[%c0_20, %c0_21, %c2_22, %c0_23] : memref<1x1x10x72xf32, #tpu.memory_space<vmem>>, vector<1x1x8x72xf32>
    %46 = vector.shape_cast %45 : vector<1x1x8x72xf32> to vector<8x72xf32>
    %47 = vector.broadcast %1 : f32 to vector<8x72xf32>
    %48 = arith.mulf %46, %47 : vector<8x72xf32>
    %49 = math.roundeven %48 : vector<8x72xf32>
    %50 = vector.broadcast %2 : f32 to vector<8x72xf32>
    %51 = arith.addf %49, %50 : vector<8x72xf32>
    %cst_24 = arith.constant -1.280000e+02 : f32
    %cst_25 = arith.constant 1.270000e+02 : f32
    %52 = vector.broadcast %cst_24 : f32 to vector<8x72xf32>
    %53 = arith.maximumf %52, %51 : vector<8x72xf32>
    %54 = vector.broadcast %cst_25 : f32 to vector<8x72xf32>
    %55 = arith.minimumf %54, %53 : vector<8x72xf32>
    %56 = vector.broadcast %0 : f32 to vector<8x72xf32>
    %57 = arith.mulf %55, %56 : vector<8x72xf32>
    %58 = vector.broadcast %3 : f32 to vector<8x72xf32>
    %59 = arith.subf %57, %58 : vector<8x72xf32>
    %60 = arith.truncf %59 : vector<8x72xf32> to vector<8x72xbf16>
    %c2_26 = arith.constant 2 : index
    %c0_27 = arith.constant 0 : index
    %c0_28 = arith.constant 0 : index
    %61 = vector.load %arg4[%c2_26, %c0_27, %c0_28] : memref<3x72x128xbf16, #tpu.memory_space<vmem>>, vector<1x72x128xbf16>
    %62 = vector.shape_cast %61 : vector<1x72x128xbf16> to vector<72x128xbf16>
    %cst_29 = arith.constant dense<0.000000e+00> : vector<8x128xf32>
    %63 = tpu.matmul %60, %62, %cst_29 {dimension_numbers = #tpu.dot_dimension_numbers<[1], [0], [0], [1], [0, 0, 1, 1], [], []>} : vector<8x72xbf16>, vector<72x128xbf16>, vector<8x128xf32> -> vector<8x128xf32>
    %64 = arith.addf %44, %63 : vector<8x128xf32>
    %c0_30 = arith.constant 0 : index
    %c0_31 = arith.constant 0 : index
    %65 = vector.load %arg5[%c0_30, %c0_31] : memref<8x128xf32, #tpu.memory_space<vmem>>, vector<1x128xf32>
    %66 = vector.broadcast %65 : vector<1x128xf32> to vector<8x128xf32>
    %67 = arith.addf %64, %66 : vector<8x128xf32>
    %cst_32 = arith.constant 0.000000e+00 : f32
    %68 = vector.broadcast %cst_32 : f32 to vector<8x128xf32>
    %69 = arith.maximumf %67, %68 : vector<8x128xf32>
    %c0_33 = arith.constant 0 : index
    %c0_34 = arith.constant 0 : index
    %c0_35 = arith.constant 0 : index
    %c0_36 = arith.constant 0 : index
    %70 = vector.load %arg6[%c0_33, %c0_34, %c0_35, %c0_36] : memref<1x1x8x128xf32, #tpu.memory_space<vmem>>, vector<1x1x8x128xf32>
    %71 = vector.shape_cast %70 : vector<1x1x8x128xf32> to vector<8x128xf32>
    %72 = vector.shape_cast %69 : vector<8x128xf32> to vector<1x1x8x128xf32>
    tpu.vector_store %arg6[%c0_33, %c0_34, %c0_35, %c0_36], %72 {strides = array<i32>} : memref<1x1x8x128xf32, #tpu.memory_space<vmem>>, vector<1x1x8x128xf32>,
    return
  }
  func.func @transform_0(%arg0: i32, %arg1: i32) -> i32 {
    %c0_i32 = arith.constant 0 : i32
    %c0_i32_0 = arith.constant 0 : i32
    return %c0_i32 : i32
  }
  func.func @transform_1(%arg0: i32, %arg1: i32) -> (i32, i32, i32, i32) {
    %c0_i32 = arith.constant 0 : i32
    %c0_i32_0 = arith.constant 0 : i32
    %c0_i32_1 = arith.constant 0 : i32
    return %arg0, %arg1, %c0_i32, %c0_i32_0 : i32, i32, i32, i32
  }
  func.func @transform_2(%arg0: i32, %arg1: i32) -> (i32, i32, i32) {
    %c0_i32 = arith.constant 0 : i32
    %c0_i32_0 = arith.constant 0 : i32
    %c0_i32_1 = arith.constant 0 : i32
    %c0_i32_2 = arith.constant 0 : i32
    return %c0_i32, %c0_i32_0, %c0_i32_1 : i32, i32, i32
  }
  func.func @transform_3(%arg0: i32, %arg1: i32) -> (i32, i32) {
    %c0_i32 = arith.constant 0 : i32
    %c0_i32_0 = arith.constant 0 : i32
    %c0_i32_1 = arith.constant 0 : i32
    return %c0_i32, %c0_i32_0 : i32, i32
  }
  func.func @transform_4(%arg0: i32, %arg1: i32) -> (i32, i32, i32, i32) {
    %c0_i32 = arith.constant 0 : i32
    %c0_i32_0 = arith.constant 0 : i32
    %c0_i32_1 = arith.constant 0 : i32
    return %arg0, %arg1, %c0_i32, %c0_i32_0 : i32, i32, i32, i32
  }
}

</mosaic_0001>

<bundles_post_ra>
// kernel: tile.8
= control target key start
LH: loop header
LB: loop body
LE: loop exit
PB: predicated region body
PF: predicated region fallthrough
CT: control target
= control target key end

     0   :  { %s28_s0 = inlined_call_operand.vmem [shape: f32[8], index: 0, kind: input, shape index: {}]   ;;  %s29_s1 = inlined_call_operand.vmem [shape: f32[16,8], index: 1, kind: output, shape index: {}]  }
   0x1   :  { %v4_v0 = vld [vmem:[%s28_s0] ss:$0 sm:$0xff] }
   0x2   :  { %5 = vst [vmem:[%s29_s1] sm:$0xff] %v4_v0  ;;  %8 = vst [vmem:[%s29_s1 + $0x8] sm:$0xff] %v4_v0 }

// kernel: quantized_model_forward.1
= control target key start
LH: loop header
LB: loop body
LE: loop exit
PB: predicated region body
PF: predicated region fallthrough
CT: control target
= control target key end

     0   :  { %9 = vsyncpa [#allocation3], 0  ;;  %s936_s15 = smov 0   ;;  %s938_s16 = smov 0   ;;  %s1100_s0 = inlined_call_operand.vmem [shape: f32[4], index: 0, kind: input, shape index: {}]   ;;  %s1101_s1 = inlined_call_operand.vmem [shape: f32[2,2,10,72], index: 1, kind: input, shape index: {}]   ;;  %s1102_s2 = inlined_call_operand.vmem [shape: bf16[3,72,128], index: 2, kind: input, shape index: {}]   ;;  %s1103_s3 = inlined_call_operand.vmem [shape: f32[8,128], index: 3, kind: input, shape index: {}]   ;;  %s1104_s4 = inlined_call_operand.vmem [shape: f32[2,2,8,128], index: 4, kind: output, shape index: {}]  }
   0x1   :  { %s940_s17 = smov 0   ;;  %s942_s18 = smov 0  }
   0x2   :  { %s944_s19 = smov 0  }
   0x3 LB: > { %s643_s20 = sadd.s32 4294967295, %s906_s19   ;;  %s24_s21 = sadd.s32 1, %s898_s17  ;;  %s906_s19 = sphi %s944_s19, %s15_s19   ;;  %s902_s18 = sphi %s942_s18, %s1110_s18   ;;  %s898_s17 = sphi %s940_s17, %s1109_s17   ;;  %s894_s16 = sphi %s938_s16, %s1108_s16   ;;  %s890_s15 = sphi %s936_s15, %s1107_s15  }
   0x4   : > { %p25_p0 = scmp.ge.s32.totalorder %s24_s21, 2  ;;  %s27_s22 = sadd.s32 1, %s902_s18 }
   0x5   : > { %p645_p1 = scmp.ge.s32.totalorder %s906_s19, 1  ;;  %p151_p2 = scmp.lt.s32.totalorder %s906_s19, 5 }
   0x6   : > { %s1112_s21 = smov (%p25_p0, %s24_s21), 0  ;;  %s1114_s22 = smov (!%p25_p0, %s27_s22), %s902_s18 }
   0x7   : > { %p969_p3 = pnand %p645_p1, %p151_p2  ;;  %p29_p4 = scmp.ge.s32.totalorder %s1114_s22, 2 }
   0x8   : > { %p973_p5 = scmp.eq.s32.totalorder %s643_s20, 0  ;;  %s164_s27 = sshll.u32 %s1100_s0, 4  ;;  %s165_s27 = int_to_ptr.vmem [resolvable:$true] %s164_s27 }
   0x9   : > { %p785_p6 = pneg %p969_p3  ;;  %s1116_s22 = smov (%p29_p4, %s1114_s22), 0 }
   0xa   : > { %s849_s28 = scalar_lea.vmem %s165_s27, 16  ;;  %p857_p12 = scmp.lt.s32.totalorder %s165_s27, %s165_s27 }
   0xb   : > { %p786_p7 = pnand %p973_p5, %p785_p6  ;;  %p850_p8 = scmp.ne.s32.totalorder %s165_s27, %s849_s28 }
   0xc   : > { %p858_p13 = scmp.lt.s32.totalorder %s849_s28, %s849_s28 }
   0xd   : > { %p851_p9 = pneg %p786_p7 }
   0xe   : > { %p859_p0 = por %p858_p13, %p857_p12 }
   0xf   : > { %p852_p10 = pnand %p851_p9, %p850_p8 }
  0x11   : > { %p853_p11 = pneg %p852_p10 }
  0x13   : > { %p860_p1 = pnand %p859_p0, %p853_p11 }
  0x15   : > { %863 = shalt.err (!%p860_p1)
}
  0x16   : > { %s908_s29 = smov [#allocation2]   ;;  %195 = sbr.rel (%p969_p3) target bundleno = 282 (0x11a), region = 36 }
  0x17   : > { %788 = dma.vmem_to_smem (!%p786_p7), %s165_s27, 16, %s908_s29, [#allocation3]  }
  0x1b   : > { %885 = dma.done.wait (%p973_p5), [#allocation3], 16  }
  0x1c   : > { %887 = vsyncadd (%p973_p5), [#allocation3], 4294967280 }
  0x1d   : > { %201 = sfence }
  0x1e   : > { %v834_v0 = vld [vmem:[%s1102_s2 + $0x44] ss:$0 sps:$4 sm:$0xff]   ;;  %vm323_vm0 = vcmask 1043456   ;;  %v909_v1 = vmov 0.0   ;;  %v835_v2 = vld [vmem:[%s1102_s2 + $0x20] ss:$0 sps:$4 sm:$0xff]  }
  0x1f   : > { %715 = vmatprep.subr.bf16.mxu0 %v909_v1  ;;  %729 = vmatprep.subr.bf16.mxu1 %v909_v1  ;;  %v325_v3 = vsel %vm323_vm0, %v834_v0, 0  ;;  %v398_v4 = vsel %vm323_vm0, %v835_v2, 0  ;;  %v836_v5 = vld [vmem:[%s1102_s2 + $0x3c] sm:$0xff]   ;;  %vm910_vm1 = vmmov 0   ;;  %p229_p2 = scmp.lt.s32.totalorder %s894_s16, 1  ;;  %p231_p3 = scmp.lt.s32.totalorder %s890_s15, 1 }
  0x20   : > { %716 = vmatpush3.bf16.msra.mxu0 %v325_v3  ;;  %730 = vmatpush3.bf16.msra.mxu1 %v398_v4  ;;  %v837_v6 = vld [vmem:[%s1102_s2 + $0x18] sm:$0xff]   ;;  %v839_v8 = vld [vmem:[%s1102_s2 + $0x10] sm:$0xff]   ;;  %s655_s25 = sld [smem:[#allocation2 + $0x1]]  ;;  %v841_v10 = vld [vmem:[%s1102_s2 + $0x8] sm:$0xff]   ;;  %vm319_vm5 = vcmask 588800  }
  0x21   : > { %717 = vmatprep.subr.bf16.mxu0 %v909_v1  ;;  %731 = vmatprep.subr.bf16.mxu1 %v909_v1  ;;  %v838_v7 = vld [vmem:[%s1102_s2 + $0x34] sm:$0xff]   ;;  %s1118_s16 = smov (!%p229_p2, %s894_s16), 1  ;;  %s1120_s15 = smov (!%p231_p3, %s890_s15), 1  ;;  %v840_v9 = vld [vmem:[%s1102_s2 + $0x2c] sm:$0xff]   ;;  %v842_v13 = vld [vmem:[%s1102_s2 + $0x24] sm:$0xff]  }
  0x22   : > { %725 = vmatprep.mubr.msk.bf16.mxu0 %vm910_vm1, %v909_v1  ;;  %739 = vmatprep.mubr.msk.bf16.mxu1 %vm910_vm1, %v909_v1  ;;  %s651_s23 = sshll.u32 %s1118_s16, 2  ;;  %s650_s24 = sshll.u32 %s1120_s15, 1  ;;  %v843_v14 = vld [vmem:[%s1102_s2] sm:$0xff]   ;;  %v844_v51 = vld [vmem:[%s1102_s2 + $0x68] ss:$0 sps:$4 sm:$0xff]   ;;  %v846_v62 = vld [vmem:[%s1102_s2 + $0x58] sm:$0xff]  }
  0x23   : > { %s235_s28 = sadd.s32 %s651_s23, %s650_s24  ;;  %s656_s13 = sld [smem:[#allocation2 + $0x2]]  ;;  %v490_v57 = vsel %vm323_vm0, %v844_v51, 0  ;;  %v845_v60 = vld [vmem:[%s1102_s2 + $0x60] sm:$0xff]   ;;  %v847_v0 = vld [vmem:[%s1102_s2 + $0x50] sm:$0xff]   ;;  %v848_v3 = vld [vmem:[%s1102_s2 + $0x48] sm:$0xff]  }
  0x24   : > { %718 = vmatpush3.bf16.msra.mxu0 %v836_v5  ;;  %732 = vmatpush3.bf16.msra.mxu1 %v837_v6  ;;  %s652_s5 = sshll.u32 %s235_s28, 3  ;;  %s247_s14 = sld [smem:[#allocation2]] }
  0x25   : > { %719 = vmatprep.subr.bf16.mxu0 %v909_v1  ;;  %733 = vmatprep.subr.bf16.mxu1 %v909_v1  ;;  %s237_s8 = scalar_lea.vmem %s1101_s1, %s652_s5  ;;  %s657_s20 = sld [smem:[#allocation2 + $0x3]] }
  0x26   : > { %v273_v11 = vld [vmem:[%s237_s8 + $0x1] sm:$0xff]  ;;  %v252_v15 = vstv %s655_s25  ;;  %s653_s7 = sshll.u32 %s1118_s16, 1 }
  0x27   : > { %v251_v12 = vld [vmem:[%s237_s8] sm:$0xff]  ;;  %v274_v17 = vmul.f32 %v273_v11, %v252_v15 }
  0x28   : > { %720 = vmatpush3.bf16.msra.mxu0 %v838_v7  ;;  %734 = vmatpush3.bf16.msra.mxu1 %v839_v8  ;;  %v440_v16 = vld [vmem:[%s237_s8 + $0x2] sm:$0xff]  ;;  %v253_v18 = vmul.f32 %v252_v15, %v251_v12  ;;  %s243_s8 = sadd.s32 %s653_s7, %s1120_s15 }
  0x29   : > { %721 = vmatprep.subr.bf16.mxu0 %v909_v1  ;;  %735 = vmatprep.subr.bf16.mxu1 %v909_v1  ;;  %v441_v19 = vmul.f32 %v440_v16, %v252_v15  ;;  %v767_v20 = vcvt.f32.s32 %v274_v17  ;;  %v765_v21 = vand.u32 2147483647, %v274_v17  ;;  %v770_v25 = vand.u32 2147483648, %v274_v17  ;;  %s654_s11 = sshll.u32 %s243_s8, 3 }
  0x2a   : > { %v759_v22 = vcvt.f32.s32 %v253_v18  ;;  %v757_v26 = vand.u32 2147483647, %v253_v18  ;;  %v762_v28 = vand.u32 2147483648, %v253_v18  ;;  %v255_v31 = vstv %s656_s13 }
  0x2b   : > { %v775_v23 = vcvt.f32.s32 %v441_v19  ;;  %v768_v24 = vcvt.s32.f32 %v767_v20  ;;  %vm766_vm2 = vcmp.lt.f32.partialorder %v765_v21, 8388608.0  ;;  %v778_v35 = vand.u32 2147483648, %v441_v19 }
  0x2c   : > { %722 = vmatpush3.bf16.msra.mxu0 %v840_v9  ;;  %736 = vmatpush3.bf16.msra.mxu1 %v841_v10  ;;  %v760_v27 = vcvt.s32.f32 %v759_v22  ;;  %vm758_vm3 = vcmp.lt.f32.partialorder %v757_v26, 8388608.0  ;;  %v773_v37 = vand.u32 2147483647, %v441_v19  ;;  %v259_v44 = vstv %s247_s14  ;;  %s245_s14 = scalar_lea.vmem %s1104_s4, %s654_s11 }
  0x2d   : > { %723 = vmatprep.subr.bf16.mxu0 %v909_v1  ;;  %737 = vmatprep.subr.bf16.mxu1 %v909_v1  ;;  %v776_v29 = vcvt.s32.f32 %v775_v23  ;;  %v769_v30 = vand.u32 2147483647, %v768_v24  ;;  %v261_v47 = vstv %s657_s20 }
  0x2e   : > { %v761_v32 = vand.u32 2147483647, %v760_v27  ;;  %vm774_vm4 = vcmp.lt.f32.partialorder %v773_v37, 8388608.0 }
  0x2f   : > { %v771_v33 = vor.u32 %v770_v25, %v769_v30  ;;  %v777_v34 = vand.u32 2147483647, %v776_v29 }
  0x30   : > { %724 = vmatpush3.bf16.msra.mxu0 %v842_v13  ;;  %738 = vmatpush3.bf16.msra.mxu1 %v843_v14  ;;  %v763_v36 = vor.u32 %v762_v28, %v761_v32 }
  0x31   : > { %743 = vmatprep.subr.bf16.mxu0 %v909_v1  ;;  %v772_v38 = vsel %vm766_vm2, %v771_v33, %v274_v17  ;;  %v779_v42 = vor.u32 %v778_v35, %v777_v34 }
  0x32   : > { %v276_v39 = vadd.f32 %v772_v38, %v255_v31  ;;  %v764_v40 = vsel %vm758_vm3, %v763_v36, %v253_v18 }
  0x33   : > { %v256_v41 = vadd.f32 %v764_v40, %v255_v31  ;;  %v780_v49 = vsel %vm774_vm4, %v779_v42, %v441_v19 }
  0x34   : > { %v277_v43 = vmax.f32 %v276_v39, -128.0  ;;  %v443_v54 = vadd.f32 %v780_v49, %v255_v31 }
  0x35   : > { %v257_v45 = vmax.f32 %v256_v41, -128.0 }
  0x36   : > { %v278_v46 = vmin.f32 %v277_v43, 127.0  ;;  %v444_v59 = vmax.f32 %v443_v54, -128.0 }
  0x37   : > { %v258_v48 = vmin.f32 %v257_v45, 127.0 }
  0x38   : > { %v279_v50 = vmul.f32 %v278_v46, %v259_v44  ;;  %v445_v61 = vmin.f32 %v444_v59, 127.0 }
  0x39   : > { %v260_v52 = vmul.f32 %v259_v44, %v258_v48 }
  0x3a   : > { %v280_v53 = vsub.f32 %v279_v50, %v261_v47  ;;  %v446_v63 = vmul.f32 %v445_v61, %v259_v44 }
  0x3b   : > { %v262_v55 = vsub.f32 %v260_v52, %v261_v47 }
  0x3c   : > { %v281_v56 = vpack.c.bf16 %v280_v53, %v280_v53  ;;  %v447_v2 = vsub.f32 %v446_v63, %v261_v47 }
  0x3d   : > { %v263_v58 = vpack.c.bf16 %v262_v55, %v262_v55 }
  0x3e   : > { %726 = vmatmul.mubr.msk.bf16.vlgmr.msra.gmra.mxu0 %vm319_vm5, %v281_v56  ;;  %v448_v4 = vpack.c.bf16 %v447_v2, %v447_v2 }
  0x3f   : > { %740 = vmatmul.mubr.msk.bf16.vlgmr.msra.gmra.mxu1 %vm319_vm5, %v263_v58  ;;  %744 = vmatpush3.bf16.msra.mxu0 %v490_v57 }
  0x40   : > { %745 = vmatprep.subr.bf16.mxu0 %v909_v1  ;;  %753 = vmatprep.mubr.msk.bf16.mxu0 %vm910_vm1, %v909_v1 }
  0x43   : > { %746 = vmatpush3.bf16.msra.mxu0 %v845_v60 }
  0x44   : > { %747 = vmatprep.subr.bf16.mxu0 %v909_v1 }
  0x47   : > { %748 = vmatpush3.bf16.msra.mxu0 %v846_v62 }
  0x48   : > { %749 = vmatprep.subr.bf16.mxu0 %v909_v1 }
  0x4b   : > { %750 = vmatpush3.bf16.msra.mxu0 %v847_v0 }
  0x4c   : > { %751 = vmatprep.subr.bf16.mxu0 %v909_v1  ;;  %v694_v1 = vld [vmem:[%s1103_s3] ss:$0 sm:$0xff] }
  0x4f   : > { %752 = vmatpush3.bf16.msra.mxu0 %v848_v3 }
  0x52   : > { %754 = vmatmul.mubr.msk.bf16.vlgmr.msra.gmra.mxu0 %vm319_vm5, %v448_v4 }
  0xfe   : > { %v361_v5 = vpop.f32.mrf.mxu0 }
  0xff   : > { %v434_v6 = vpop.f32.mrf.mxu1 }
 0x100   : > { %v727_v7 = vpop.f32.mrf.mxu0  ;;  %v435_v13 = vadd.f32 %v434_v6, %v361_v5 }
 0x101   : > { %v741_v8 = vpop.f32.mrf.mxu1 }
 0x102   : > { %v364_v9 = vpop.f32.mrf.mxu0 }
 0x103   : > { %v437_v10 = vpop.f32.mrf.mxu1 }
 0x104   : > { %v728_v11 = vpop.f32.mrf.mxu0 }
 0x105   : > { %v742_v12 = vpop.f32.mrf.mxu1 }
 0x112   : > { %v526_v14 = vpop.f32.mrf.mxu0 }
 0x113   : > { %v532_v15 = vadd.f32 %v526_v14, %v435_v13 }
 0x114   : > { %v755_v16 = vpop.f32.mrf.mxu0 }
 0x115   : > { %v538_v17 = vadd.f32 %v694_v1, %v532_v15 }
 0x116   : > { %v529_v18 = vpop.f32.mrf.mxu0 }
 0x117   : > { %v539_v19 = vmax.f32 %v538_v17, 0.0 }
 0x118   : > { %v756_v20 = vpop.f32.mrf.mxu0 }
 0x119   : > { %540 = vst [vmem:[%s245_s14] sm:$0xff] %v539_v19 }
 0x11a PF: > { %s15_s19 = sadd.s32 1, %s906_s19   ;;  %s1107_s15 = smov %s898_s17 }
 0x11b   : > { %p12_p4 = scmp.ge.s32.totalorder %s15_s19, 6   ;;  %s1108_s16 = smov %s902_s18 }
 0x11c   : > { %s1109_s17 = smov %s1112_s21  ;;  %s1110_s18 = smov %s1116_s22 }
 0x11d   :  { %14 = sbr.rel (!%p12_p4) target bundleno = 3 (0x3), region = 73 }
 0x122   :  { %568 = vsyncpa [#allocation3], 1 }
 0x123   :  { %570 = vsyncpa [#allocation3 + $0x1], 1 }

</bundles_post_ra>
